<compile_context>
chip_gen: v7x
topology: tpu7x:2x2x1
jax: 0.10.0
libtpu: 0.0.40
codegen_flags: <defaults>
</compile_context>

<pallas_src>
import jax
import jax.numpy as jnp
from jax.experimental import pallas as pl
from jax.experimental.pallas import tpu as pltpu

OBS_DIM = 4        # CartPole observation dimension
OBS_PAD = 8        # padded contraction dim (one f32 sublane group)
HIDDEN = 64        # tianshou preprocess MLP hidden width (Actor head expects 64)
N_ACT = 2          # CartPole Discrete(2)
N_SUB = 8          # head padded 2 -> 8 sublanes (output slab is (8, Bp), lane-dense on batch)
NEG_BIG = -1e30    # padded-logit bias -> exp() underflows to 0 in softmax (f32 only!)
LANE = 128
TB_TARGET = 1024   # batch columns per grid step


def actor_kernel(obs_ref, w1_ref, b1_ref, w2_ref, b2_ref, w3_ref, b3_ref,
                 probs_ref):
    """Feature-major forward: activations are (features, batch=lanes).
    3 bf16 matmuls (f32 acc) + ReLU + softmax over 8 sublanes."""
    x = obs_ref[...]                                                    # (8, TB) bf16

    # preprocess MLP layer 1: Linear(obs_dim, 64) + ReLU   (y^T = W @ x^T + b)
    h1 = jnp.dot(w1_ref[...], x, preferred_element_type=jnp.float32) + b1_ref[...]
    h1 = jnp.maximum(h1, 0.0)                                           # (64, TB) f32

    # preprocess MLP layer 2: Linear(64, 64) + ReLU
    h2 = jnp.dot(w2_ref[...], h1.astype(jnp.bfloat16),
                 preferred_element_type=jnp.float32) + b2_ref[...]
    h2 = jnp.maximum(h2, 0.0)                                           # (64, TB) f32

    # Actor head: Linear(64, n_output), sublane-padded 2 -> 8
    logits = jnp.dot(w3_ref[...], h2.astype(jnp.bfloat16),
                     preferred_element_type=jnp.float32) + b3_ref[...]  # (8, TB) f32

    # softmax over the tiny sublane axis; padded rows have bias -1e30 -> exp == 0.
    # Exact division (not approx reciprocal): the kernel is HBM-bound, so this is free and
    # keeps row sums at exactly ~1 for downstream PPO log-prob / entropy.
    m = jnp.max(logits, axis=0, keepdims=True)                          # (1, TB)
    e = jnp.exp(logits - m)                                             # (8, TB)
    probs_ref[...] = e / jnp.sum(e, axis=0, keepdims=True)


def _round_up(x, m):
    return (x + m - 1) // m * m


def actor_forward(obs, params):
    """Wrapper mirroring Actor.forward(obs, state=None) -> (probs, state)."""
    w1, b1, w2, b2, w3, b3 = params
    assert b3.dtype == jnp.float32, "NEG_BIG padded-bias trick requires f32 logits/bias"
    B = obs.shape[0]

    # Batch tile on the lane axis: multiple of 128; for large B force >= 2 grid steps so the
    # "parallel" grid axis can shard across v7x's two TensorCores.
    half = _round_up(-(-B // 2), LANE)
    TB = max(LANE, min(TB_TARGET, half))
    Bp = _round_up(B, TB)
    grid = (Bp // TB,)

    # One fused pad: feature dim 4 -> 8 (zero rows of W1 ignore it) and batch -> Bp, bf16 input.
    obs_t = jnp.pad(obs.astype(jnp.bfloat16).T,
                    ((0, OBS_PAD - obs.shape[1]), (0, Bp - B)))          # (8, Bp) bf16

    const = lambda a: pl.BlockSpec(a.shape, lambda i: (0,) * a.ndim)     # VMEM-resident weights

    probs_t = pl.pallas_call(
        actor_kernel,
        out_shape=jax.ShapeDtypeStruct((N_SUB, Bp), jnp.float32),
        grid=grid,
        in_specs=[
            pl.BlockSpec((OBS_PAD, TB), lambda i: (0, i)),               # batch-tiled obs
            const(w1), const(b1),
            const(w2), const(b2),
            const(w3), const(b3),
        ],
        out_specs=pl.BlockSpec((N_SUB, TB), lambda i: (0, i)),           # (8, TB) lane-dense slab
        compiler_params=pltpu.CompilerParams(
            dimension_semantics=("parallel",),
        ),
    )(obs_t, w1, b1, w2, b2, w3, b3)

    probs = probs_t[:N_ACT, :B].T                                        # (B, 2), cheap slice
    state = None  # MLP preprocess_net returns state unchanged (None)
    return probs, state


def init_params(key):
    """PyTorch-Linear-style init (U[-1/sqrt(fan_in), 1/sqrt(fan_in)]).  Weights are kept in the
    native PyTorch layout [out_features, in_features] (which is exactly what the feature-major
    kernel needs), padded/cast: W bf16, biases f32 column vectors."""
    ks = jax.random.split(key, 6)

    def linear(kw, kb, fan_in, fan_out):
        bound = 1.0 / jnp.sqrt(jnp.float32(fan_in))
        w = jax.random.uniform(kw, (fan_out, fan_in), jnp.float32, -bound, bound)
        b = jax.random.uniform(kb, (fan_out, 1), jnp.float32, -bound, bound)
        return w, b

    w1, b1 = linear(ks[0], ks[1], OBS_DIM, HIDDEN)
    w2, b2 = linear(ks[2], ks[3], HIDDEN, HIDDEN)
    w3, b3 = linear(ks[4], ks[5], HIDDEN, N_ACT)

    # pad contraction dim 4 -> 8 with zero columns (no effect on the product)
    w1 = jnp.pad(w1, ((0, 0), (0, OBS_PAD - OBS_DIM)))
    # pad head 2 -> 8 sublanes: zero weight rows, NEG_BIG bias so padded rows vanish in softmax
    w3 = jnp.pad(w3, ((0, N_SUB - N_ACT), (0, 0)))
    b3 = jnp.pad(b3, ((0, N_SUB - N_ACT), (0, 0)), constant_values=NEG_BIG)

    return (w1.astype(jnp.bfloat16), b1,
            w2.astype(jnp.bfloat16), b2,
            w3.astype(jnp.bfloat16), b3)


def actor_reference(obs, params):
    """Pure-JAX reference on the same (padded, bf16, feature-major) parameters."""
    w1, b1, w2, b2, w3, b3 = params
    x = jnp.pad(obs.astype(jnp.bfloat16).T, ((0, OBS_PAD - obs.shape[1]), (0, 0)))
    h1 = jnp.maximum(jnp.dot(w1, x, preferred_element_type=jnp.float32) + b1, 0.0)
    h2 = jnp.maximum(jnp.dot(w2, h1.astype(jnp.bfloat16),
                             preferred_element_type=jnp.float32) + b2, 0.0)
    logits = jnp.dot(w3, h2.astype(jnp.bfloat16),
                     preferred_element_type=jnp.float32) + b3
    return jax.nn.softmax(logits, axis=0)[:N_ACT, :].T


if __name__ == "__main__":
    key = jax.random.PRNGKey(0)
    k_obs, k_params = jax.random.split(key)

    B = 8
    obs = jax.random.normal(k_obs, (B, OBS_DIM), jnp.float32)
    params = init_params(k_params)

    probs, state = actor_forward(obs, params)
    probs = jax.block_until_ready(probs)

    # sanity: shape, state passthrough, softmax rows sum to ~1 (exact division -> tight tol)
    assert probs.shape == (B, N_ACT)
    assert state is None
    assert bool(jnp.allclose(jnp.sum(probs, axis=-1), 1.0, atol=1e-3))

    # correctness vs pure-JAX reference on identical params
    ref = actor_reference(obs, params)
    assert bool(jnp.allclose(probs, ref, atol=2e-2))

    print("KERNEL_OK")
</pallas_src>

<mosaic_0001>
module attributes {stable_mosaic.version = 11 : i64} {
  func.func @actor_kernel(%arg0: i32, %arg1: memref<8x128xbf16, #tpu.memory_space<vmem>>, %arg2: memref<64x8xbf16, #tpu.memory_space<vmem>>, %arg3: memref<64x1xf32, #tpu.memory_space<vmem>>, %arg4: memref<64x64xbf16, #tpu.memory_space<vmem>>, %arg5: memref<64x1xf32, #tpu.memory_space<vmem>>, %arg6: memref<8x64xbf16, #tpu.memory_space<vmem>>, %arg7: memref<8x1xf32, #tpu.memory_space<vmem>>, %arg8: memref<8x128xf32, #tpu.memory_space<vmem>>) attributes {dimension_semantics = [#tpu.dimension_semantics<parallel>], iteration_bounds = array<i64: 1>, scalar_prefetch = 0 : i64, scratch_operands = 0 : i64, tpu.core_type = #tpu.core_type<tc>, window_params = [{transform_indices = @transform_0, window_bounds = array<i64: 8, 128>}, {pipeline_mode = #tpu.pipeline_mode<synchronous>, transform_indices = @transform_1, window_bounds = array<i64: 64, 8>}, {pipeline_mode = #tpu.pipeline_mode<synchronous>, transform_indices = @transform_2, window_bounds = array<i64: 64, 1>}, {pipeline_mode = #tpu.pipeline_mode<synchronous>, transform_indices = @transform_3, window_bounds = array<i64: 64, 64>}, {pipeline_mode = #tpu.pipeline_mode<synchronous>, transform_indices = @transform_4, window_bounds = array<i64: 64, 1>}, {pipeline_mode = #tpu.pipeline_mode<synchronous>, transform_indices = @transform_5, window_bounds = array<i64: 8, 64>}, {pipeline_mode = #tpu.pipeline_mode<synchronous>, transform_indices = @transform_6, window_bounds = array<i64: 8, 1>}, {transform_indices = @transform_7, window_bounds = array<i64: 8, 128>}]} {
    %c0 = arith.constant 0 : index
    %c0_0 = arith.constant 0 : index
    %0 = vector.load %arg1[%c0, %c0_0] : memref<8x128xbf16, #tpu.memory_space<vmem>>, vector<8x128xbf16>
    %c0_1 = arith.constant 0 : index
    %c0_2 = arith.constant 0 : index
    %1 = vector.load %arg2[%c0_1, %c0_2] : memref<64x8xbf16, #tpu.memory_space<vmem>>, vector<64x8xbf16>
    %cst = arith.constant dense<0.000000e+00> : vector<64x128xf32>
    %2 = tpu.matmul %1, %0, %cst {dimension_numbers = #tpu.dot_dimension_numbers<[1], [0], [0], [1], [0, 0, 1, 1], [], []>} : vector<64x8xbf16>, vector<8x128xbf16>, vector<64x128xf32> -> vector<64x128xf32>
    %c0_3 = arith.constant 0 : index
    %c0_4 = arith.constant 0 : index
    %3 = vector.load %arg3[%c0_3, %c0_4] : memref<64x1xf32, #tpu.memory_space<vmem>>, vector<64x1xf32>
    %4 = vector.broadcast %3 : vector<64x1xf32> to vector<64x128xf32>
    %5 = arith.addf %2, %4 : vector<64x128xf32>
    %cst_5 = arith.constant 0.000000e+00 : f32
    %6 = vector.broadcast %cst_5 : f32 to vector<64x128xf32>
    %7 = arith.maximumf %5, %6 : vector<64x128xf32>
    %c0_6 = arith.constant 0 : index
    %c0_7 = arith.constant 0 : index
    %8 = vector.load %arg4[%c0_6, %c0_7] : memref<64x64xbf16, #tpu.memory_space<vmem>>, vector<64x64xbf16>
    %9 = arith.truncf %7 : vector<64x128xf32> to vector<64x128xbf16>
    %cst_8 = arith.constant dense<0.000000e+00> : vector<64x128xf32>
    %10 = tpu.matmul %8, %9, %cst_8 {dimension_numbers = #tpu.dot_dimension_numbers<[1], [0], [0], [1], [0, 0, 1, 1], [], []>} : vector<64x64xbf16>, vector<64x128xbf16>, vector<64x128xf32> -> vector<64x128xf32>
    %c0_9 = arith.constant 0 : index
    %c0_10 = arith.constant 0 : index
    %11 = vector.load %arg5[%c0_9, %c0_10] : memref<64x1xf32, #tpu.memory_space<vmem>>, vector<64x1xf32>
    %12 = vector.broadcast %11 : vector<64x1xf32> to vector<64x128xf32>
    %13 = arith.addf %10, %12 : vector<64x128xf32>
    %cst_11 = arith.constant 0.000000e+00 : f32
    %14 = vector.broadcast %cst_11 : f32 to vector<64x128xf32>
    %15 = arith.maximumf %13, %14 : vector<64x128xf32>
    %c0_12 = arith.constant 0 : index
    %c0_13 = arith.constant 0 : index
    %16 = vector.load %arg6[%c0_12, %c0_13] : memref<8x64xbf16, #tpu.memory_space<vmem>>, vector<8x64xbf16>
    %17 = arith.truncf %15 : vector<64x128xf32> to vector<64x128xbf16>
    %cst_14 = arith.constant dense<0.000000e+00> : vector<8x128xf32>
    %18 = tpu.matmul %16, %17, %cst_14 {dimension_numbers = #tpu.dot_dimension_numbers<[1], [0], [0], [1], [0, 0, 1, 1], [], []>} : vector<8x64xbf16>, vector<64x128xbf16>, vector<8x128xf32> -> vector<8x128xf32>
    %c0_15 = arith.constant 0 : index
    %c0_16 = arith.constant 0 : index
    %19 = vector.load %arg7[%c0_15, %c0_16] : memref<8x1xf32, #tpu.memory_space<vmem>>, vector<8x1xf32>
    %20 = vector.broadcast %19 : vector<8x1xf32> to vector<8x128xf32>
    %21 = arith.addf %18, %20 : vector<8x128xf32>
    %cst_17 = arith.constant dense<0xFF800000> : vector<128xf32>
    %22 = vector.multi_reduction <maximumf>, %21, %cst_17 [0] : vector<8x128xf32> to vector<128xf32>
    %23 = vector.shape_cast %22 : vector<128xf32> to vector<1x128xf32>
    %24 = vector.broadcast %23 : vector<1x128xf32> to vector<8x128xf32>
    %25 = arith.subf %21, %24 : vector<8x128xf32>
    %26 = math.exp %25 : vector<8x128xf32>
    %cst_18 = arith.constant dense<0.000000e+00> : vector<128xf32>
    %27 = vector.multi_reduction <add>, %26, %cst_18 [0] : vector<8x128xf32> to vector<128xf32>
    %28 = vector.shape_cast %27 : vector<128xf32> to vector<1x128xf32>
    %29 = vector.broadcast %28 : vector<1x128xf32> to vector<8x128xf32>
    %30 = arith.divf %26, %29 : vector<8x128xf32>
    %c0_19 = arith.constant 0 : index
    %c0_20 = arith.constant 0 : index
    %31 = vector.load %arg8[%c0_19, %c0_20] : memref<8x128xf32, #tpu.memory_space<vmem>>, vector<8x128xf32>
    tpu.vector_store %arg8[%c0_19, %c0_20], %30 {strides = array<i32>} : memref<8x128xf32, #tpu.memory_space<vmem>>, vector<8x128xf32>,
    return
  }
  func.func @transform_0(%arg0: i32) -> (i32, i32) {
    %c0_i32 = arith.constant 0 : i32
    %c0_i32_0 = arith.constant 0 : i32
    return %c0_i32, %arg0 : i32, i32
  }
  func.func @transform_1(%arg0: i32) -> (i32, i32) {
    %c0_i32 = arith.constant 0 : i32
    %c0_i32_0 = arith.constant 0 : i32
    %c0_i32_1 = arith.constant 0 : i32
    return %c0_i32, %c0_i32_0 : i32, i32
  }
  func.func @transform_2(%arg0: i32) -> (i32, i32) {
    %c0_i32 = arith.constant 0 : i32
    %c0_i32_0 = arith.constant 0 : i32
    %c0_i32_1 = arith.constant 0 : i32
    return %c0_i32, %c0_i32_0 : i32, i32
  }
  func.func @transform_3(%arg0: i32) -> (i32, i32) {
    %c0_i32 = arith.constant 0 : i32
    %c0_i32_0 = arith.constant 0 : i32
    %c0_i32_1 = arith.constant 0 : i32
    return %c0_i32, %c0_i32_0 : i32, i32
  }
  func.func @transform_4(%arg0: i32) -> (i32, i32) {
    %c0_i32 = arith.constant 0 : i32
    %c0_i32_0 = arith.constant 0 : i32
    %c0_i32_1 = arith.constant 0 : i32
    return %c0_i32, %c0_i32_0 : i32, i32
  }
  func.func @transform_5(%arg0: i32) -> (i32, i32) {
    %c0_i32 = arith.constant 0 : i32
    %c0_i32_0 = arith.constant 0 : i32
    %c0_i32_1 = arith.constant 0 : i32
    return %c0_i32, %c0_i32_0 : i32, i32
  }
  func.func @transform_6(%arg0: i32) -> (i32, i32) {
    %c0_i32 = arith.constant 0 : i32
    %c0_i32_0 = arith.constant 0 : i32
    %c0_i32_1 = arith.constant 0 : i32
    return %c0_i32, %c0_i32_0 : i32, i32
  }
  func.func @transform_7(%arg0: i32) -> (i32, i32) {
    %c0_i32 = arith.constant 0 : i32
    %c0_i32_0 = arith.constant 0 : i32
    return %c0_i32, %arg0 : i32, i32
  }
}

</mosaic_0001>

<bundles_post_ra>
// kernel: tpu_custom_call.1
= control target key start
LH: loop header
LB: loop body
LE: loop exit
PB: predicated region body
PF: predicated region fallthrough
CT: control target
= control target key end

     0   :  { %vm118_vm0 = vcmask 1043456   ;;  %vm105_vm1 = vcmask 64512   ;;  %v563_v5 = vmov 0   ;;  %s709_s0 = inlined_call_operand.vmem [shape: bf16[8,128], index: 0, kind: input, shape index: {}]   ;;  %s710_s1 = inlined_call_operand.vmem [shape: bf16[64,8], index: 1, kind: input, shape index: {}]   ;;  %s711_s2 = inlined_call_operand.vmem [shape: f32[64,1], index: 2, kind: input, shape index: {}]   ;;  %s712_s3 = inlined_call_operand.vmem [shape: bf16[64,64], index: 3, kind: input, shape index: {}]   ;;  %s713_s4 = inlined_call_operand.vmem [shape: f32[64,1], index: 4, kind: input, shape index: {}]   ;;  %s714_s5 = inlined_call_operand.vmem [shape: bf16[8,64], index: 5, kind: input, shape index: {}]   ;;  %s715_s6 = inlined_call_operand.vmem [shape: f32[8,1], index: 6, kind: input, shape index: {}]   ;;  %s716_s7 = inlined_call_operand.hbm [shape: f32[8,128], index: 7, kind: output, shape index: {}]  }
   0x1   :  { %v28_v0 = vld [vmem:[%s709_s0] sm:$0xf]  ;;  %v528_v3 = vld [vmem:[%s710_s1 + $0x8] sm:$0xff]   ;;  %v529_v4 = vld [vmem:[%s710_s1 + $0x10] sm:$0xff]   ;;  %525 = vset.pattern.permute.xlu0 %v563_v5  ;;  %526 = vset.pattern.permute.xlu1 %v563_v5 }
   0x2   :  { %v527_v1 = vld [vmem:[%s710_s1] sm:$0xff]   ;;  %520 = vmatprep.subr.msk.bf16.mxu0 %vm118_vm0, %v28_v0  ;;  %v120_v2 = vsel %vm118_vm0, %v28_v0, 0  ;;  %v39_v7 = vld [vmem:[%s711_s2 + $0x10] sm:$0xff]  ;;  %v38_v8 = vld [vmem:[%s711_s2 + $0x8] sm:$0xff] }
   0x3   :  { %483 = vmatpush3.bf16.msra.mxu0 %v120_v2  ;;  %484 = vmatprep.mubr.msk.bf16.mxu0 %vm105_vm1, %v527_v1  ;;  %v37_v6 = vld [vmem:[%s711_s2] sm:$0xff]  ;;  %v40_v9 = vld [vmem:[%s711_s2 + $0x18] sm:$0xff]  ;;  %v42_v12 = vld [vmem:[%s711_s2 + $0x28] sm:$0xff] }
   0x4   :  { %47 = vperm.xlu0 %525, %v37_v6   ;;  %57 = vperm.xlu1 %526, %v39_v7   ;;  %v530_v10 = vld [vmem:[%s710_s1 + $0x18] sm:$0xff]   ;;  %v41_v11 = vld [vmem:[%s711_s2 + $0x20] sm:$0xff] }
   0x6   :  { %485 = vmatmul.mubr.msk.bf16.vlgmr.msra.gmra.mrb[0].mxu0 %vm105_vm1, %v528_v3 }
   0x7   :  { %488 = vmatprep.mubr.msk.bf16.mxu0 %vm105_vm1, %v529_v4 }
   0x8   :  { %52 = vperm.xlu0 %525, %v38_v8   ;;  %62 = vperm.xlu1 %526, %v40_v9  }
   0xc   :  { %67 = vperm.xlu0 %525, %v41_v11  }
   0xe   :  { %489 = vmatmul.mubr.msk.bf16.gmra.mrb[4].mxu0 %vm105_vm1, %v530_v10 }
   0xf   :  { %12 = vsyncpa [#allocation3], 0  ;;  %v43_v13 = vld [vmem:[%s711_s2 + $0x30] sm:$0xff]  ;;  %72 = vperm.xlu1 %526, %v42_v12   ;;  %v44_v14 = vld [vmem:[%s711_s2 + $0x38] sm:$0xff]  ;;  %vm275_vm2 = vcmask 523264   ;;  %v564_v0 = vmov 0.0  }
  0x10   :  { %77 = vperm.xlu0 %525, %v43_v13   ;;  %v207_v15 = vld [vmem:[%s713_s4] sm:$0xff]  ;;  %v208_v16 = vld [vmem:[%s713_s4 + $0x8] sm:$0xff]  ;;  %v209_v17 = vld [vmem:[%s713_s4 + $0x10] sm:$0xff]  ;;  %508 = vmatprep.subr.bf16.mxu0 %v564_v0  ;;  %vm565_vm3 = vmmov 0  }
  0x11   :  { %v210_v18 = vld [vmem:[%s713_s4 + $0x18] sm:$0xff]  ;;  %v211_v19 = vld [vmem:[%s713_s4 + $0x20] sm:$0xff]  ;;  %v212_v20 = vld [vmem:[%s713_s4 + $0x28] sm:$0xff]  ;;  %516 = vmatprep.mubr.msk.bf16.mxu0 %vm565_vm3, %v564_v0 }
  0x12   :  { %v213_v21 = vld [vmem:[%s713_s4 + $0x30] sm:$0xff]  ;;  %v214_v22 = vld [vmem:[%s713_s4 + $0x38] sm:$0xff]  ;;  %v366_v23 = vld [vmem:[%s715_s6] sm:$0xff] }
  0x13   :  { %82 = vperm.xlu1 %526, %v44_v14   ;;  %v531_v24 = vld [vmem:[%s712_s3] sm:$0xff]   ;;  %v532_v61 = vld [vmem:[%s712_s3 + $0x8] sm:$0xff]   ;;  %v533_v62 = vld [vmem:[%s712_s3 + $0x10] sm:$0xff]  }
  0x14   :  { %217 = vperm.xlu0 %525, %v207_v15   ;;  %500 = vmatprep.mubr.msk.bf16.mxu1 %vm275_vm2, %v531_v24  ;;  %v534_v63 = vld [vmem:[%s712_s3 + $0x18] sm:$0xff]  }
  0x17   :  { %222 = vperm.xlu1 %526, %v208_v16  }
  0x18   :  { %227 = vperm.xlu0 %525, %v209_v17  }
  0x1b   :  { %232 = vperm.xlu1 %526, %v210_v18  }
  0x1c   :  { %237 = vperm.xlu0 %525, %v211_v19  }
  0x1f   :  { %242 = vperm.xlu1 %526, %v212_v20  }
  0x20   :  { %247 = vperm.xlu0 %525, %v213_v21  }
  0x23   :  { %252 = vperm.xlu1 %526, %v214_v22  }
  0x24   :  { %369 = vperm.xlu0 %525, %v366_v23  }
  0x83   :  { %v48_v25 = vpop.permute.xlu0 %47  ;;  %v58_v26 = vpop.permute.xlu1 %57 }
  0x87   :  { %v53_v27 = vpop.permute.xlu0 %52  ;;  %v63_v28 = vpop.permute.xlu1 %62 }
  0x8b   :  { %v68_v32 = vpop.permute.xlu0 %67 }
  0x8e   :  { %v73_v37 = vpop.permute.xlu1 %72 }
  0x8f   :  { %v78_v44 = vpop.permute.xlu0 %77 }
  0x92   :  { %v83_v49 = vpop.permute.xlu1 %82 }
  0x93   :  { %v218_v1 = vpop.permute.xlu0 %217 }
  0x96   :  { %v223_v2 = vpop.permute.xlu1 %222 }
  0x97   :  { %v228_v3 = vpop.permute.xlu0 %227 }
  0x9a   :  { %v233_v4 = vpop.permute.xlu1 %232 }
  0x9b   :  { %v238_v8 = vpop.permute.xlu0 %237 }
  0x9e   :  { %v243_v13 = vpop.permute.xlu1 %242 }
  0x9f   :  { %v248_v20 = vpop.permute.xlu0 %247 }
  0xd9   :  { %v486_v29 = vpop.f32.mrb[0].mxu0 }
  0xda   :  { %v165_v30 = vadd.f32 %v486_v29, %v58_v26  ;;  %v156_v31 = vpop.f32.mrb[1].mxu0 }
  0xdb   :  { %v157_v33 = vadd.f32 %v156_v31, %v48_v25  ;;  %v487_v34 = vpop.f32.mrb[2].mxu0  ;;  %v253_v25 = vpop.permute.xlu1 %252 }
  0xdc   :  { %v168_v35 = vadd.f32 %v487_v34, %v63_v28  ;;  %v159_v36 = vpop.f32.mrb[3].mxu0  ;;  %v189_v39 = vmax.f32 %v165_v30, 0.0 }
  0xdd   :  { %v160_v38 = vadd.f32 %v159_v36, %v53_v27  ;;  %v187_v41 = vmax.f32 %v157_v33, 0.0 }
  0xde   :  { %v190_v40 = vmax.f32 %v168_v35, 0.0 }
  0xdf   :  { %v188_v42 = vmax.f32 %v160_v38, 0.0  ;;  %v370_v38 = vpop.permute.xlu0 %369 }
  0xe0   :  { %v204_v43 = vpack.c.bf16 %v190_v40, %v189_v39 }
  0xe1   :  { %v490_v45 = vpop.f32.mrb[4].mxu0  ;;  %v203_v46 = vpack.c.bf16 %v188_v42, %v187_v41 }
  0xe2   :  { %v181_v47 = vadd.f32 %v490_v45, %v78_v44  ;;  %v172_v48 = vpop.f32.mrb[5].mxu0 }
  0xe3   :  { %v173_v50 = vadd.f32 %v172_v48, %v68_v32  ;;  %v491_v51 = vpop.f32.mrb[6].mxu0  ;;  %492 = vmatprep.subr.bf16.mxu1 %v203_v46 }
  0xe4   :  { %v184_v52 = vadd.f32 %v491_v51, %v83_v49  ;;  %v175_v53 = vpop.f32.mrb[7].mxu0  ;;  %493 = vmatpush3.bf16.msra.mxu1 %v203_v46  ;;  %v193_v55 = vmax.f32 %v181_v47, 0.0 }
  0xe5   :  { %v176_v54 = vadd.f32 %v175_v53, %v73_v37  ;;  %494 = vmatprep.subr.bf16.mxu1 %v204_v43  ;;  %v191_v57 = vmax.f32 %v173_v50, 0.0  ;;  %v361_v37 = vld [vmem:[%s714_s5] sm:$0xf]  ;;  %s566_s5 = smov [#allocation2]  }
  0xe6   :  { %v194_v56 = vmax.f32 %v184_v52, 0.0  ;;  %s439_s24 = sshll.u32 %s566_s5, 4  ;;  %s440_s24 = int_to_ptr.vmem [resolvable:$true] %s439_s24 }
  0xe7   :  { %v192_v58 = vmax.f32 %v176_v54, 0.0  ;;  %s539_s25 = scalar_lea.vmem %s440_s24, 128  ;;  %p544_p1 = scmp.lt.s32.totalorder %s440_s24, %s440_s24 }
  0xe8   :  { %v206_v59 = vpack.c.bf16 %v194_v56, %v193_v55  ;;  %495 = vmatpush3.bf16.msra.mxu1 %v204_v43  ;;  %p540_p0 = scmp.ne.s32.totalorder %s440_s24, %s539_s25  ;;  %p545_p2 = scmp.lt.s32.totalorder %s539_s25, %s539_s25 }
  0xe9   :  { %v205_v60 = vpack.c.bf16 %v192_v58, %v191_v57 }
  0xea   :  { %p546_p3 = por %p545_p2, %p544_p1 }
  0xeb   :  { %496 = vmatprep.subr.bf16.mxu1 %v205_v60 }
  0xec   :  { %497 = vmatpush3.bf16.msra.mxu1 %v205_v60  ;;  %p547_p4 = pnand %p546_p3, %p540_p0 }
  0xed   :  { %498 = vmatprep.subr.bf16.mxu1 %v206_v59 }
  0xf0   :  { %499 = vmatpush3.bf16.msra.mxu1 %v206_v59 }
  0xf3   :  { %501 = vmatmul.mubr.msk.bf16.vlgmr.msra.gmra.mrb[0].mxu1 %vm275_vm2, %v532_v61 }
  0xf4   :  { %504 = vmatprep.mubr.msk.bf16.mxu1 %vm275_vm2, %v533_v62 }
  0xfb   :  { %505 = vmatmul.mubr.msk.bf16.gmra.mrb[4].mxu1 %vm275_vm2, %v534_v63 }
 0x1c6   :  { %v502_v5 = vpop.f32.mrb[0].mxu1 }
 0x1c7   :  { %v331_v6 = vadd.f32 %v502_v5, %v228_v3  ;;  %v322_v7 = vpop.f32.mrb[1].mxu1 }
 0x1c8   :  { %v323_v9 = vadd.f32 %v322_v7, %v218_v1  ;;  %v503_v10 = vpop.f32.mrb[2].mxu1 }
 0x1c9   :  { %v334_v11 = vadd.f32 %v503_v10, %v233_v4  ;;  %v325_v12 = vpop.f32.mrb[3].mxu1  ;;  %v355_v15 = vmax.f32 %v331_v6, 0.0 }
 0x1ca   :  { %v326_v14 = vadd.f32 %v325_v12, %v223_v2  ;;  %v353_v17 = vmax.f32 %v323_v9, 0.0 }
 0x1cb   :  { %v356_v16 = vmax.f32 %v334_v11, 0.0 }
 0x1cc   :  { %v354_v18 = vmax.f32 %v326_v14, 0.0 }
 0x1cd   :  { %v363_v19 = vpack.c.bf16 %v356_v16, %v355_v15 }
 0x1ce   :  { %v362_v21 = vpack.c.bf16 %v354_v18, %v353_v17  ;;  %v506_v22 = vpop.f32.mrb[4].mxu1 }
 0x1cf   :  { %v347_v23 = vadd.f32 %v506_v22, %v248_v20  ;;  %v338_v24 = vpop.f32.mrb[5].mxu1 }
 0x1d0   :  { %v339_v26 = vadd.f32 %v338_v24, %v238_v8  ;;  %v507_v27 = vpop.f32.mrb[6].mxu1  ;;  %509 = vmatpush3.bf16.msra.mxu0 %v362_v21 }
 0x1d1   :  { %v350_v28 = vadd.f32 %v507_v27, %v253_v25  ;;  %v341_v29 = vpop.f32.mrb[7].mxu1  ;;  %510 = vmatprep.subr.bf16.mxu0 %v564_v0  ;;  %v359_v31 = vmax.f32 %v347_v23, 0.0 }
 0x1d2   :  { %v342_v30 = vadd.f32 %v341_v29, %v243_v13  ;;  %v357_v33 = vmax.f32 %v339_v26, 0.0 }
 0x1d3   :  { %v360_v32 = vmax.f32 %v350_v28, 0.0 }
 0x1d4   :  { %v358_v34 = vmax.f32 %v342_v30, 0.0  ;;  %511 = vmatpush3.bf16.msra.mxu0 %v363_v19 }
 0x1d5   :  { %v365_v35 = vpack.c.bf16 %v360_v32, %v359_v31  ;;  %512 = vmatprep.subr.bf16.mxu0 %v564_v0 }
 0x1d6   :  { %v364_v36 = vpack.c.bf16 %v358_v34, %v357_v33 }
 0x1d8   :  { %513 = vmatpush3.bf16.msra.mxu0 %v364_v36 }
 0x1d9   :  { %514 = vmatprep.subr.bf16.mxu0 %v564_v0 }
 0x1dc   :  { %515 = vmatpush3.bf16.msra.mxu0 %v365_v35 }
 0x1df   :  { %517 = vmatmul.mubr.msk.bf16.vlgmr.msra.gmra.mrb[8].mxu0 %vm275_vm2, %v361_v37 }
 0x2b2   :  { %v409_v39 = vpop.f32.mrb[8].mxu0 }
 0x2b3   :  { %v410_v40 = vadd.f32 %v409_v39, %v370_v38  ;;  %v518_v41 = vpop.f32.mrb[9].mxu0 }
 0x2b4   :  { %v412_v42 = vpop.f32.mrb[10].mxu0 }
 0x2b5   :  { %v415_v43 = vrot.slane %v410_v40, 4  ;;  %v519_v44 = vpop.f32.mrb[11].mxu0 }
 0x2b7   :  { %v416_v45 = vmax.f32 %v410_v40, %v415_v43 }
 0x2b9   :  { %v417_v46 = vrot.slane %v416_v45, 2 }
 0x2bb   :  { %v418_v47 = vmax.f32 %v416_v45, %v417_v46 }
 0x2bd   :  { %v419_v48 = vrot.slane %v418_v47, 1 }
 0x2bf   :  { %v420_v49 = vmax.f32 %v418_v47, %v419_v48 }
 0x2c1   :  { %v421_v50 = vsub.f32 %v410_v40, %v420_v49 }
 0x2c3   :  { %v422_v51 = vmul.f32 1.442695, %v421_v50 }
 0x2c5   :  { %535 = vpow2.f32 %v422_v51 }
 0x2cf   :  { %v536_v52 = vpop.eup %535 }
 0x2d0   :  { %v424_v53 = vrot.slane %v536_v52, 4 }
 0x2d2   :  { %v425_v54 = vadd.f32 %v536_v52, %v424_v53 }
 0x2d4   :  { %v426_v55 = vrot.slane %v425_v54, 2 }
 0x2d6   :  { %v427_v56 = vadd.f32 %v426_v55, %v425_v54 }
 0x2d8   :  { %v428_v57 = vrot.slane %v427_v56, 1 }
 0x2da   :  { %v429_v58 = vadd.f32 %v428_v57, %v427_v56 }
 0x2dc   :  { %537 = vrcp.f32 %v429_v58 }
 0x2e6   :  { %v538_v59 = vpop.eup %537 }
 0x2e7   :  { %v431_v60 = vmul.f32 %v538_v59, %v536_v52 }
 0x2e9   :  { %432 = vst [vmem:[#allocation2] sm:$0xff] %v431_v60 }
 0x2ea   :  { %550 = shalt.err (!%p547_p4)
}
 0x2eb   :  { %s551_s28 = scalar_lea.hbm %s716_s7, 128 }
 0x2ec   :  { %p552_p5 = scmp.ne.s32.totalorder %s716_s7, %s551_s28  ;;  %p555_p6 = scmp.lt.u32.totalorder %s551_s28, %s716_s7 }
 0x2ee   :  { %p557_p7 = pnand %p555_p6, %p552_p5 }
 0x2f0   :  { %560 = shalt.err (!%p557_p7)
}
 0x2f1   :  { %442 = dma.vmem_to_hbm [thread:$0]  %s440_s24, 128, %s716_s7, [#allocation3]  }
 0x2f2   :  { %561 = dma.done.wait [#allocation3], 128  }
 0x2f3   :  { %562 = vsyncadd [#allocation3], 4294967168 }
 0x2f4   :  { %446 = vsyncpa [#allocation3], 1 }

</bundles_post_ra>
